<compile_context>
chip_gen: v7x
topology: tpu7x:2x2x1
jax: 0.10.0
libtpu: 0.0.40
codegen_flags: <defaults>
</compile_context>

<pallas_src>
import functools
import math

import jax
import jax.numpy as jnp
from jax.experimental import pallas as pl
from jax.experimental.pallas import tpu as pltpu


_VMEM_LIMIT = 32 * 1024 * 1024   # safe on v5e/v6e/v7x; doubles v5e's default


# ---------------------------------------------------------------------------
# Pallas kernels
# ---------------------------------------------------------------------------
def _linear_kernel(x_ref, w_ref, b_ref, o_ref):
    """y = x @ w.T + b  (x: (TM, Din), w: (Dout, Din), b: (1, Dout) f32)."""
    y = jax.lax.dot_general(
        x_ref[...], w_ref[...],
        dimension_numbers=(((1,), (1,)), ((), ())),
        preferred_element_type=jnp.float32,
    )
    o_ref[...] = (y + b_ref[...].astype(jnp.float32)).astype(o_ref.dtype)


def _attention_kernel(q_ref, k_ref, v_ref, *rest, n_heads, d_k, zero_pad,
                      causal, q_scale):
    """All heads of one (batch, query-tile) block.

    q_ref:  (1, TQ, d_model) VMEM slab (head-concatenated layout)
    k_ref:  (1, S,  d_model)
    v_ref:  (1, S,  d_model)
    rest:   [bias_ref (TQ, S) f32]  when not causal, then o_ref (1, TQ, d_model)
    """
    if causal:
        (o_ref,) = rest
        bias_ref = None
    else:
        bias_ref, o_ref = rest

    tq = q_ref.shape[1]
    s_kv = k_ref.shape[1]

    # additive softmax bias shared by all heads (one add per score, no select)
    if causal:
        q0 = pl.program_id(1) * tq
        row = jax.lax.broadcasted_iota(jnp.int32, (tq, s_kv), 0) + q0
        col = jax.lax.broadcasted_iota(jnp.int32, (tq, s_kv), 1)
        bias = jnp.where(col > row, jnp.float32(-1e32), jnp.float32(0.0))
    else:
        bias = bias_ref[...]

    q = q_ref[0]                       # (TQ, d_model), bf16/f32
    if q_scale != 1.0:                 # only when scale not folded into weights
        q = q * q_scale
    k = k_ref[0]                       # (S, d_model)
    v = v_ref[0]                       # (S, d_model)

    for h in range(n_heads):           # unrolled head loop
        lo = h * d_k
        # scores = q_h @ k_h^T  — contraction on last dims, no transpose
        s = jax.lax.dot_general(
            q[:, lo:lo + d_k], k[:, lo:lo + d_k],
            dimension_numbers=(((1,), (1,)), ((), ())),
            preferred_element_type=jnp.float32)          # (TQ, S) f32
        s = s + bias

        # numerically-stable softmax; reciprocal goes to the EUP slot
        m = jnp.max(s, axis=-1, keepdims=True)
        e = jnp.exp(s - m)
        p = e * pl.reciprocal(jnp.sum(e, axis=-1, keepdims=True), approx=True)

        # dropout: identity (eval mode)

        out_h = jnp.dot(p.astype(v.dtype), v[:, lo:lo + d_k],
                        preferred_element_type=jnp.float32)  # (TQ, d_k)
        # write this head's columns directly — no concat, nothing kept live
        o_ref[0, :, lo:lo + d_k] = out_h.astype(o_ref.dtype)

    if zero_pad:
        # zeroing the first softmax row == zeroing the first context row
        @pl.when(pl.program_id(1) == 0)
        def _():
            o_ref[0, 0:1, :] = jnp.zeros((1, o_ref.shape[2]), o_ref.dtype)


# ---------------------------------------------------------------------------
# Wrappers around pallas_call
# ---------------------------------------------------------------------------
def pallas_linear(x2d, weight, bias, *, tm=512, out_dtype=None):
    """PyTorch nn.Linear semantics: y = x @ weight.T + bias.

    x2d: (N, Din), weight: (Dout, Din) — any matmul dtype (bf16 recommended),
    bias: (Dout,) f32.  Tiled over rows; weight/bias blocks stay resident.
    """
    n, din = x2d.shape
    dout = weight.shape[0]
    out_dtype = out_dtype if out_dtype is not None else x2d.dtype
    if n <= tm:
        tm = n                       # single full-extent block
    else:
        tm = max(8, (tm // 8) * 8)   # sublane-aligned row tile

    return pl.pallas_call(
        _linear_kernel,
        out_shape=jax.ShapeDtypeStruct((n, dout), out_dtype),
        grid=(pl.cdiv(n, tm),),
        in_specs=[
            pl.BlockSpec((tm, din), lambda i: (i, 0)),
            pl.BlockSpec((dout, din), lambda i: (0, 0)),
            pl.BlockSpec((1, dout), lambda i: (0, 0)),
        ],
        out_specs=pl.BlockSpec((tm, dout), lambda i: (i, 0)),
        compiler_params=pltpu.CompilerParams(
            dimension_semantics=("parallel",),
            vmem_limit_bytes=_VMEM_LIMIT),
    )(x2d, weight, bias.reshape(1, dout).astype(jnp.float32))


def pallas_attention(q_p, k_p, v_p, q_blk, k_blk, v_blk, *, n_heads, d_k,
                     zero_pad, causal, bias=None, q_scale=1.0, tq_max=512):
    """q_p/k_p/v_p: (bs, seq, C) activations in head-concatenated layout.

    `*_blk` are column-block offsets (units of d_model) so the kernel can read
    straight out of a fused (bs, seq, k*d_model) qkv buffer.  `causal=True`
    generates the mask in-kernel (no (S,S) HBM traffic); otherwise `bias` is an
    additive f32 (seq, seq) tensor (0 where allowed, -1e32 where masked).
    Returns (bs, seq, d_model) in q_p.dtype.
    """
    bs, seq = q_p.shape[0], q_p.shape[1]
    d_model = n_heads * d_k

    # query-row tiling: bounds VMEM transients to TQ*S and feeds both v7x TCs
    if seq <= tq_max:
        tq = seq
    else:
        tq = max(8, (tq_max // 8) * 8)
    nq = pl.cdiv(seq, tq)

    kernel = functools.partial(_attention_kernel, n_heads=n_heads, d_k=d_k,
                               zero_pad=zero_pad, causal=causal,
                               q_scale=q_scale)

    in_specs = [
        pl.BlockSpec((1, tq, d_model), lambda b, i: (b, i, q_blk)),
        pl.BlockSpec((1, seq, d_model), lambda b, i: (b, 0, k_blk)),
        pl.BlockSpec((1, seq, d_model), lambda b, i: (b, 0, v_blk)),
    ]
    args = [q_p, k_p, v_p]
    if not causal:
        in_specs.append(pl.BlockSpec((tq, seq), lambda b, i: (i, 0)))
        args.append(bias)

    return pl.pallas_call(
        kernel,
        out_shape=jax.ShapeDtypeStruct((bs, seq, d_model), q_p.dtype),
        grid=(bs, nq),
        in_specs=in_specs,
        out_specs=pl.BlockSpec((1, tq, d_model), lambda b, i: (b, i, 0)),
        compiler_params=pltpu.CompilerParams(
            dimension_semantics=("parallel", "parallel"),
            vmem_limit_bytes=_VMEM_LIMIT),
    )(*args)


# ---------------------------------------------------------------------------
# MultiHeadAttention forward (glue in plain JAX, hot paths in Pallas)
# ---------------------------------------------------------------------------
def multi_head_attention_forward(params, q, k, v, mask, zero_pad, *, n_heads,
                                 d_k, kq_same, causal=False,
                                 compute_dtype=jnp.bfloat16):
    """Forward pass of the simplekt MultiHeadAttention module.

    `causal=True` promises that `mask` is the standard lower-triangular mask
    shared across batch/heads; the mask is then regenerated in-kernel and never
    DMA'd.  Matmuls run in `compute_dtype` with f32 accumulation / f32 softmax.
    """
    bs, seq, d_model = q.shape
    n_rows = bs * seq
    scale = 1.0 / math.sqrt(d_k)
    cdt = compute_dtype

    k_w, k_b = params["k_w"], params["k_b"]
    v_w, v_b = params["v_w"], params["v_b"]
    if kq_same:
        q_w, q_b = k_w, k_b
    else:
        q_w, q_b = params["q_w"], params["q_b"]

    same_qkv = (q is k) and (k is v)
    q_scale_in_kernel = 1.0

    if same_qkv:
        x2d = q.reshape(n_rows, d_model).astype(cdt)
        if kq_same:
            # Q projection == K projection: project only K and V (2/3 work);
            # scale the Q slab once inside the attention kernel.
            w_f = jnp.concatenate([k_w, v_w], axis=0).astype(cdt)
            b_f = jnp.concatenate([k_b, v_b], axis=0)
            qkv = pallas_linear(x2d, w_f, b_f, out_dtype=cdt)
            qkv = qkv.reshape(bs, seq, 2 * d_model)
            q_scale_in_kernel = scale
            if d_model % 128 == 0:
                q_p = k_p = v_p = qkv
                q_blk, k_blk, v_blk = 0, 0, 1
            else:
                k_p = qkv[:, :, :d_model]
                v_p = qkv[:, :, d_model:]
                q_p = k_p
                q_blk = k_blk = v_blk = 0
        else:
            # fold 1/sqrt(d_k) into the Q weight/bias (free at trace time)
            w_f = jnp.concatenate([q_w * scale, k_w, v_w], axis=0).astype(cdt)
            b_f = jnp.concatenate([q_b * scale, k_b, v_b], axis=0)
            qkv = pallas_linear(x2d, w_f, b_f, out_dtype=cdt)
            qkv = qkv.reshape(bs, seq, 3 * d_model)
            if d_model % 128 == 0:
                q_p = k_p = v_p = qkv
                q_blk, k_blk, v_blk = 0, 1, 2
            else:
                q_p = qkv[:, :, :d_model]
                k_p = qkv[:, :, d_model:2 * d_model]
                v_p = qkv[:, :, 2 * d_model:]
                q_blk = k_blk = v_blk = 0
    else:
        k2d = k.reshape(n_rows, d_model).astype(cdt)
        k_p = pallas_linear(k2d, k_w.astype(cdt), k_b,
                            out_dtype=cdt).reshape(bs, seq, d_model)
        if kq_same and (q is k):
            q_p = k_p                              # reuse K projection
            q_scale_in_kernel = scale
        else:
            q2d = q.reshape(n_rows, d_model).astype(cdt)
            q_p = pallas_linear(q2d, (q_w * scale).astype(cdt), q_b * scale,
                                out_dtype=cdt).reshape(bs, seq, d_model)
        v2d = v.reshape(n_rows, d_model).astype(cdt)
        v_p = pallas_linear(v2d, v_w.astype(cdt), v_b,
                            out_dtype=cdt).reshape(bs, seq, d_model)
        q_blk = k_blk = v_blk = 0

    if causal:
        attn_bias = None
    else:
        # additive f32 bias: 0 where attention allowed, -1e32 where masked
        mask2d = mask.reshape(mask.shape[-2], mask.shape[-1])
        attn_bias = jnp.where(mask2d == 0, jnp.float32(-1e32),
                              jnp.float32(0.0))

    ctx = pallas_attention(q_p, k_p, v_p, q_blk, k_blk, v_blk,
                           n_heads=n_heads, d_k=d_k, zero_pad=zero_pad,
                           causal=causal, bias=attn_bias,
                           q_scale=q_scale_in_kernel)

    # ctx is already (bs, seq, d_model) in head-concatenated layout (bf16)
    out = pallas_linear(ctx.reshape(n_rows, d_model),
                        params["out_w"].astype(cdt), params["out_b"],
                        out_dtype=q.dtype)
    return out.reshape(bs, seq, d_model)


# ---------------------------------------------------------------------------
# Pure-JAX reference (mirrors the PyTorch module) and parameter init
# ---------------------------------------------------------------------------
def reference_forward(params, q, k, v, mask, zero_pad, *, n_heads, d_k,
                      kq_same):
    bs, seq, d_model = q.shape

    def lin(x, w, b):
        return x @ w.T + b

    def split_heads(x):
        return x.reshape(bs, seq, n_heads, d_k).transpose(0, 2, 1, 3)

    k_h = split_heads(lin(k, params["k_w"], params["k_b"]))
    if kq_same:
        q_h = split_heads(lin(q, params["k_w"], params["k_b"]))
    else:
        q_h = split_heads(lin(q, params["q_w"], params["q_b"]))
    v_h = split_heads(lin(v, params["v_w"], params["v_b"]))

    scores = jnp.einsum("bhqd,bhkd->bhqk", q_h, k_h) / math.sqrt(d_k)
    scores = jnp.where(mask == 0, jnp.float32(-1e32), scores)
    p = jax.nn.softmax(scores, axis=-1)
    if zero_pad:
        p = p.at[:, :, 0, :].set(0.0)
    ctx = jnp.einsum("bhqk,bhkd->bhqd", p, v_h)
    concat = ctx.transpose(0, 2, 1, 3).reshape(bs, seq, d_model)
    return lin(concat, params["out_w"], params["out_b"])


def init_params(key, d_model, kq_same):
    def xavier(k):
        bound = math.sqrt(6.0 / (d_model + d_model))
        return jax.random.uniform(k, (d_model, d_model), jnp.float32,
                                  -bound, bound)

    keys = jax.random.split(key, 4)
    params = {
        "k_w": xavier(keys[0]), "k_b": jnp.zeros((d_model,), jnp.float32),
        "v_w": xavier(keys[1]), "v_b": jnp.zeros((d_model,), jnp.float32),
        "out_w": xavier(keys[2]), "out_b": jnp.zeros((d_model,), jnp.float32),
    }
    if not kq_same:
        params["q_w"] = xavier(keys[3])
        params["q_b"] = jnp.zeros((d_model,), jnp.float32)
    return params


def _check(out, ref):
    # bf16 MXU data -> looser tolerance than pure-f32 math
    err = float(jnp.max(jnp.abs(out.astype(jnp.float32) - ref)))
    assert jnp.allclose(out.astype(jnp.float32), ref,
                        rtol=5e-2, atol=7.5e-2), err


# ---------------------------------------------------------------------------
if __name__ == "__main__":
    bs, seq, n_heads, d_k = 2, 8, 4, 32
    d_model = n_heads * d_k            # 128 -> lane-dense attention blocks
    zero_pad = True

    root = jax.random.PRNGKey(0)
    kp, kx, kv2 = jax.random.split(root, 3)

    # causal mask as used by simplekt: (1, 1, seq, seq), 1 where allowed
    mask = jnp.tril(jnp.ones((seq, seq), jnp.int32)).reshape(1, 1, seq, seq)
    x = jax.random.normal(kx, (bs, seq, d_model), jnp.float32)

    # Case 1: self-attention, kq_same=False -> fused scaled-QKV projection,
    # causal mask generated in-kernel (no mask DMA).
    params = init_params(kp, d_model, kq_same=False)
    out = multi_head_attention_forward(params, x, x, x, mask, zero_pad,
                                       n_heads=n_heads, d_k=d_k,
                                       kq_same=False, causal=True)
    jax.block_until_ready(out)
    assert out.shape == (bs, seq, d_model)
    ref = reference_forward(params, x, x, x, mask, zero_pad,
                            n_heads=n_heads, d_k=d_k, kq_same=False)
    _check(out, ref)

    # Case 2: kq_same=True with q is k (K projection reused for Q), distinct v,
    # explicit mask -> additive-bias path.
    params2 = init_params(kp, d_model, kq_same=True)
    v_in = jax.random.normal(kv2, (bs, seq, d_model), jnp.float32)
    out2 = multi_head_attention_forward(params2, x, x, v_in, mask, zero_pad,
                                        n_heads=n_heads, d_k=d_k,
                                        kq_same=True, causal=False)
    jax.block_until_ready(out2)
    ref2 = reference_forward(params2, x, x, v_in, mask, zero_pad,
                             n_heads=n_heads, d_k=d_k, kq_same=True)
    _check(out2, ref2)

    # Case 3: kq_same=True with q = k = v -> deduplicated [K,V] fused projection
    # (2/3 of the MXU work), causal in-kernel mask.
    out3 = multi_head_attention_forward(params2, x, x, x, mask, zero_pad,
                                        n_heads=n_heads, d_k=d_k,
                                        kq_same=True, causal=True)
    jax.block_until_ready(out3)
    ref3 = reference_forward(params2, x, x, x, mask, zero_pad,
                             n_heads=n_heads, d_k=d_k, kq_same=True)
    _check(out3, ref3)

    print("KERNEL_OK")
</pallas_src>

<mosaic_0001>
module attributes {stable_mosaic.version = 11 : i64} {
  func.func @_linear_kernel(%arg0: i32, %arg1: memref<16x128xbf16, #tpu.memory_space<vmem>>, %arg2: memref<384x128xbf16, #tpu.memory_space<vmem>>, %arg3: memref<1x384xf32, #tpu.memory_space<vmem>>, %arg4: memref<16x384xbf16, #tpu.memory_space<vmem>>) attributes {dimension_semantics = [#tpu.dimension_semantics<parallel>], iteration_bounds = array<i64: 1>, scalar_prefetch = 0 : i64, scratch_operands = 0 : i64, tpu.core_type = #tpu.core_type<tc>, window_params = [{transform_indices = @transform_0, window_bounds = array<i64: 16, 128>}, {pipeline_mode = #tpu.pipeline_mode<synchronous>, transform_indices = @transform_1, window_bounds = array<i64: 384, 128>}, {pipeline_mode = #tpu.pipeline_mode<synchronous>, transform_indices = @transform_2, window_bounds = array<i64: 1, 384>}, {transform_indices = @transform_3, window_bounds = array<i64: 16, 384>}]} {
    %c0 = arith.constant 0 : index
    %c0_0 = arith.constant 0 : index
    %0 = vector.load %arg1[%c0, %c0_0] : memref<16x128xbf16, #tpu.memory_space<vmem>>, vector<16x128xbf16>
    %c0_1 = arith.constant 0 : index
    %c0_2 = arith.constant 0 : index
    %1 = vector.load %arg2[%c0_1, %c0_2] : memref<384x128xbf16, #tpu.memory_space<vmem>>, vector<384x128xbf16>
    %cst = arith.constant dense<0.000000e+00> : vector<16x384xf32>
    %2 = tpu.matmul %0, %1, %cst {dimension_numbers = #tpu.dot_dimension_numbers<[1], [1], [0], [0], [0, 0, 1, 0], [], []>} : vector<16x128xbf16>, vector<384x128xbf16>, vector<16x384xf32> -> vector<16x384xf32>
    %c0_3 = arith.constant 0 : index
    %c0_4 = arith.constant 0 : index
    %3 = vector.load %arg3[%c0_3, %c0_4] : memref<1x384xf32, #tpu.memory_space<vmem>>, vector<1x384xf32>
    %4 = vector.broadcast %3 : vector<1x384xf32> to vector<16x384xf32>
    %5 = arith.addf %2, %4 : vector<16x384xf32>
    %6 = arith.truncf %5 : vector<16x384xf32> to vector<16x384xbf16>
    %c0_5 = arith.constant 0 : index
    %c0_6 = arith.constant 0 : index
    %7 = vector.load %arg4[%c0_5, %c0_6] : memref<16x384xbf16, #tpu.memory_space<vmem>>, vector<16x384xbf16>
    tpu.vector_store %arg4[%c0_5, %c0_6], %6 {strides = array<i32>} : memref<16x384xbf16, #tpu.memory_space<vmem>>, vector<16x384xbf16>,
    return
  }
  func.func @transform_0(%arg0: i32) -> (i32, i32) {
    %c0_i32 = arith.constant 0 : i32
    %c0_i32_0 = arith.constant 0 : i32
    return %arg0, %c0_i32 : i32, i32
  }
  func.func @transform_1(%arg0: i32) -> (i32, i32) {
    %c0_i32 = arith.constant 0 : i32
    %c0_i32_0 = arith.constant 0 : i32
    %c0_i32_1 = arith.constant 0 : i32
    return %c0_i32, %c0_i32_0 : i32, i32
  }
  func.func @transform_2(%arg0: i32) -> (i32, i32) {
    %c0_i32 = arith.constant 0 : i32
    %c0_i32_0 = arith.constant 0 : i32
    %c0_i32_1 = arith.constant 0 : i32
    return %c0_i32, %c0_i32_0 : i32, i32
  }
  func.func @transform_3(%arg0: i32) -> (i32, i32) {
    %c0_i32 = arith.constant 0 : i32
    %c0_i32_0 = arith.constant 0 : i32
    return %arg0, %c0_i32 : i32, i32
  }
}

</mosaic_0001>

<bundles_post_ra>
// kernel: tpu_custom_call.1
= control target key start
LH: loop header
LB: loop body
LE: loop exit
PB: predicated region body
PF: predicated region fallthrough
CT: control target
= control target key end

     0   :  { %8 = vsyncpa [#allocation3], 0  ;;  %s641_s0 = inlined_call_operand.hbm [shape: bf16[16,128], index: 0, kind: input, shape index: {}]   ;;  %s642_s1 = inlined_call_operand.hbm [shape: bf16[384,128], index: 1, kind: input, shape index: {}]   ;;  %s643_s2 = inlined_call_operand.vmem [shape: f32[1,384], index: 2, kind: input, shape index: {}]   ;;  %s644_s3 = inlined_call_operand.hbm [shape: bf16[16,384], index: 3, kind: output, shape index: {}]  }
   0x1   :  { %9 = vsyncpa [#allocation6], 0 }
   0x2   :  { %10 = vsyncpa [#allocation4], 0  ;;  %s573_s12 = smov [#allocation2]   ;;  %s501_s16 = scalar_lea.hbm %s641_s0, 128 }
   0x3   :  { %s16_s13 = sshll.u32 %s573_s12, 4  ;;  %p502_p0 = scmp.ne.s32.totalorder %s641_s0, %s501_s16  ;;  %s17_s13 = int_to_ptr.vmem [resolvable:$true] %s16_s13 }
   0x4   :  { %p505_p1 = scmp.lt.u32.totalorder %s501_s16, %s641_s0 }
   0x6   :  { %p507_p2 = pnand %p505_p1, %p502_p0 }
   0x8   :  { %510 = shalt.err (!%p507_p2)
}
   0x9   :  { %s511_s21 = scalar_lea.vmem %s17_s13, 128  ;;  %p516_p4 = scmp.lt.s32.totalorder %s17_s13, %s17_s13 }
   0xa   :  { %p512_p3 = scmp.ne.s32.totalorder %s17_s13, %s511_s21  ;;  %p517_p5 = scmp.lt.s32.totalorder %s511_s21, %s511_s21 }
   0xc   :  { %p518_p6 = por %p517_p5, %p516_p4 }
   0xe   :  { %p519_p7 = pnand %p518_p6, %p512_p3 }
  0x10   :  { %522 = shalt.err (!%p519_p7)
}
  0x11   :  { %s574_s22 = smov 64   ;;  %s575_s23 = smov 4  }
  0x12   :  { %22 = dma.hbm_to_vmem [thread:$0]  %s641_s0, 128, %s17_s13, [#allocation3], %s574_s22, %s574_s22, %s575_s23  }
  0x13   :  { %s576_s26 = smov [#allocation5]   ;;  %s523_s30 = scalar_lea.hbm %s642_s1, 3072 }
  0x14   :  { %s28_s27 = sshll.u32 %s576_s26, 4  ;;  %p524_p8 = scmp.ne.s32.totalorder %s642_s1, %s523_s30  ;;  %s29_s27 = int_to_ptr.vmem [resolvable:$true] %s28_s27 }
  0x15   :  { %p527_p9 = scmp.lt.u32.totalorder %s523_s30, %s642_s1 }
  0x17   :  { %p529_p10 = pnand %p527_p9, %p524_p8 }
  0x19   :  { %532 = shalt.err (!%p529_p10)
}
  0x1a   :  { %s533_s8 = scalar_lea.vmem %s29_s27, 3072  ;;  %p538_p12 = scmp.lt.s32.totalorder %s29_s27, %s29_s27 }
  0x1b   :  { %p534_p11 = scmp.ne.s32.totalorder %s29_s27, %s533_s8  ;;  %p539_p13 = scmp.lt.s32.totalorder %s533_s8, %s533_s8 }
  0x1d   :  { %p540_p0 = por %p539_p13, %p538_p12 }
  0x1f   :  { %p541_p1 = pnand %p540_p0, %p534_p11 }
  0x21   :  { %544 = shalt.err (!%p541_p1)
}
  0x22   :  { %34 = dma.hbm_to_vmem [thread:$0]  %s642_s1, 3072, %s29_s27, [#allocation6], %s574_s22, %s574_s22, %s575_s23  }
  0x23   :  { %567 = dma.done.wait [#allocation3], 128  }
  0x24   :  { %568 = vsyncadd [#allocation3], 4294967168 }
  0x25   :  { %569 = dma.done.wait [#allocation6], 3072  }
  0x26   :  { %570 = vsyncadd [#allocation6], 4294964224  ;;  %v577_v0 = vmov 0.0   ;;  %vm578_vm0 = vmmov 0   ;;  %v476_v1 = vld [vmem:[#allocation5 + $0x40] sm:$0xff]   ;;  %v479_v4 = vld [vmem:[#allocation5 + $0x48] sm:$0xff]   ;;  %v96_v26 = vlaneseq }
  0x27   :  { %447 = vmatprep.subr.bf16.mxu1 %v577_v0  ;;  %463 = vmatprep.mubr.msk.bf16.mxu1 %vm578_vm0, %v577_v0  ;;  %v477_v2 = vld [vmem:[#allocation5 + $0x80] sm:$0xff]   ;;  %v480_v5 = vld [vmem:[#allocation5 + $0x88] sm:$0xff]   ;;  %v482_v7 = vld [vmem:[#allocation5 + $0x50] sm:$0xff]   ;;  %s579_s11 = smov [#allocation7]  }
  0x28   :  { %420 = vmatprep.subr.bf16.mxu0 %v476_v1  ;;  %v478_v3 = vld [vmem:[#allocation5] sm:$0xff]   ;;  %448 = vmatpush3.bf16.xpose.msra.mxu1 %v477_v2  ;;  %v481_v6 = vld [vmem:[#allocation5 + $0x8] sm:$0xff]   ;;  %v483_v8 = vld [vmem:[#allocation5 + $0x90] sm:$0xff]   ;;  %v97_v27 = vshrl.u32 %v96_v26, 7  ;;  %s374_s12 = sshll.u32 %s579_s11, 4  ;;  %s375_s12 = int_to_ptr.vmem [resolvable:$true] %s374_s12 }
  0x29   :  { %421 = vmatpush3.bf16.xpose.msra.mxu0 %v478_v3  ;;  %449 = vmatprep.subr.bf16.mxu1 %v577_v0  ;;  %v484_v9 = vld [vmem:[#allocation5 + $0x10] sm:$0xff]   ;;  %v485_v10 = vld [vmem:[#allocation5 + $0x58] sm:$0xff]   ;;  %v488_v14 = vld [vmem:[#allocation5 + $0x60] sm:$0xff]   ;;  %p550_p3 = scmp.lt.s32.totalorder %s375_s12, %s375_s12 }
  0x2a   :  { %422 = vmatprep.subr.bf16.mxu0 %v479_v4  ;;  %v486_v11 = vld [vmem:[#allocation5 + $0x98] sm:$0xff]   ;;  %v489_v15 = vld [vmem:[#allocation5 + $0xa0] sm:$0xff]   ;;  %v491_v17 = vld [vmem:[#allocation5 + $0x68] sm:$0xff]   ;;  %v106_v28 = vsub.s32 2, %v97_v27  ;;  %v98_v30 = vsub.s32 0, %v97_v27  ;;  %v102_v31 = vsub.s32 1, %v97_v27 }
  0x2b   :  { %v487_v12 = vld [vmem:[#allocation5 + $0x18] sm:$0xff]   ;;  %v490_v16 = vld [vmem:[#allocation5 + $0x20] sm:$0xff]   ;;  %v492_v18 = vld [vmem:[#allocation5 + $0xa8] sm:$0xff]  }
  0x2c   :  { %v500_v13 = vld [vmem:[#allocation2] sm:$0xff]   ;;  %v493_v19 = vld [vmem:[#allocation5 + $0x28] sm:$0xff]   ;;  %v494_v20 = vld [vmem:[#allocation5 + $0x70] sm:$0xff]  }
  0x2d   :  { %436 = vmatprep.mubr.bf16.mxu0 %v500_v13  ;;  %v495_v21 = vld [vmem:[#allocation5 + $0xb0] sm:$0xff]   ;;  %v497_v23 = vld [vmem:[#allocation5 + $0x78] sm:$0xff]  }
  0x2e   :  { %v496_v22 = vld [vmem:[#allocation5 + $0x30] sm:$0xff]   ;;  %v498_v24 = vld [vmem:[#allocation5 + $0xb8] sm:$0xff]  }
  0x2f   :  { %v499_v25 = vld [vmem:[#allocation5 + $0x38] sm:$0xff]  }
  0x30   :  { %450 = vmatpush3.bf16.xpose.msra.mxu1 %v480_v5  ;;  %v94_v29 = vld [vmem:[%s643_s2] sm:$0x7]  ;;  %s545_s2 = scalar_lea.vmem %s375_s12, 384 }
  0x31   :  { %423 = vmatpush3.bf16.xpose.msra.mxu0 %v481_v6  ;;  %451 = vmatprep.subr.bf16.mxu1 %v577_v0  ;;  %v107_v32 = vrot.slane %v94_v29, %v106_v28  ;;  %v99_v33 = vrot.slane %v94_v29, %v98_v30  ;;  %v103_v34 = vrot.slane %v94_v29, %v102_v31  ;;  %p546_p2 = scmp.ne.s32.totalorder %s375_s12, %s545_s2  ;;  %p551_p4 = scmp.lt.s32.totalorder %s545_s2, %s545_s2 }
  0x32   :  { %424 = vmatprep.subr.bf16.mxu0 %v482_v7 }
  0x33   :  { %p552_p5 = por %p551_p4, %p550_p3 }
  0x35   :  { %p553_p6 = pnand %p552_p5, %p546_p2 }
  0x38   :  { %452 = vmatpush3.bf16.xpose.msra.mxu1 %v483_v8 }
  0x39   :  { %425 = vmatpush3.bf16.xpose.msra.mxu0 %v484_v9  ;;  %453 = vmatprep.subr.bf16.mxu1 %v577_v0 }
  0x3a   :  { %426 = vmatprep.subr.bf16.mxu0 %v485_v10 }
  0x40   :  { %454 = vmatpush3.bf16.xpose.msra.mxu1 %v486_v11 }
  0x41   :  { %427 = vmatpush3.bf16.xpose.msra.mxu0 %v487_v12  ;;  %455 = vmatprep.subr.bf16.mxu1 %v577_v0 }
  0x42   :  { %428 = vmatprep.subr.bf16.mxu0 %v488_v14 }
  0x48   :  { %456 = vmatpush3.bf16.xpose.msra.mxu1 %v489_v15 }
  0x49   :  { %429 = vmatpush3.bf16.xpose.msra.mxu0 %v490_v16  ;;  %457 = vmatprep.subr.bf16.mxu1 %v577_v0 }
  0x4a   :  { %430 = vmatprep.subr.bf16.mxu0 %v491_v17 }
  0x50   :  { %458 = vmatpush3.bf16.xpose.msra.mxu1 %v492_v18 }
  0x51   :  { %431 = vmatpush3.bf16.xpose.msra.mxu0 %v493_v19  ;;  %459 = vmatprep.subr.bf16.mxu1 %v577_v0 }
  0x52   :  { %432 = vmatprep.subr.bf16.mxu0 %v494_v20 }
  0x58   :  { %460 = vmatpush3.bf16.xpose.msra.mxu1 %v495_v21 }
  0x59   :  { %433 = vmatpush3.bf16.xpose.msra.mxu0 %v496_v22  ;;  %461 = vmatprep.subr.bf16.mxu1 %v577_v0 }
  0x5a   :  { %434 = vmatprep.subr.bf16.mxu0 %v497_v23 }
  0x60   :  { %462 = vmatpush3.bf16.xpose.msra.mxu1 %v498_v24 }
  0x61   :  { %435 = vmatpush3.bf16.xpose.msra.mxu0 %v499_v25 }
  0x67   :  { %464 = vmatmul.mubr.bf16.vlgmr.msra.gmra.mrb[0].mxu1 %v500_v13 }
  0x68   :  { %437 = vmatmul.mubr.bf16.vlgmr.msra.gmra.mrb[0].mxu0 %v500_v13 }
 0x13a   :  { %v338_v35 = vpop.f32.mrb[0].mxu1 }
 0x13b   :  { %v339_v36 = vadd.f32 %v338_v35, %v107_v32  ;;  %v295_v37 = vpop.f32.mrb[0].mxu0  ;;  %v465_v38 = vpop.f32.mrb[1].mxu1 }
 0x13c   :  { %v296_v39 = vadd.f32 %v295_v37, %v99_v33  ;;  %v297_v40 = vpop.f32.mrb[1].mxu0  ;;  %v341_v41 = vpop.f32.mrb[2].mxu1 }
 0x13d   :  { %v417_v42 = vpack.c.bf16 %v339_v36, %v339_v36  ;;  %v298_v43 = vadd.f32 %v297_v40, %v103_v34  ;;  %v342_v44 = vadd.f32 %v341_v41, %v107_v32  ;;  %v299_v45 = vpop.f32.mrb[2].mxu0  ;;  %v466_v46 = vpop.f32.mrb[3].mxu1 }
 0x13e   :  { %v300_v47 = vadd.f32 %v299_v45, %v99_v33  ;;  %v301_v48 = vpop.f32.mrb[3].mxu0 }
 0x13f   :  { %366 = vst [vmem:[#allocation7 + $0x8] sm:$0xf] %v417_v42  ;;  %v416_v49 = vpack.c.bf16 %v298_v43, %v296_v39  ;;  %v419_v50 = vpack.c.bf16 %v342_v44, %v342_v44  ;;  %v302_v51 = vadd.f32 %v301_v48, %v103_v34 }
 0x141   :  { %365 = vst [vmem:[#allocation7] sm:$0xff] %v416_v49  ;;  %368 = vst [vmem:[#allocation7 + $0x14] sm:$0xf] %v419_v50  ;;  %v418_v52 = vpack.c.bf16 %v302_v51, %v300_v47 }
 0x143   :  { %367 = vst [vmem:[#allocation7 + $0xc] sm:$0xff] %v418_v52 }
 0x144   :  { %556 = shalt.err (!%p553_p6)
}
 0x145   :  { %s557_s15 = scalar_lea.hbm %s644_s3, 384 }
 0x146   :  { %p558_p7 = scmp.ne.s32.totalorder %s644_s3, %s557_s15  ;;  %p561_p8 = scmp.lt.u32.totalorder %s557_s15, %s644_s3 }
 0x148   :  { %p563_p9 = pnand %p561_p8, %p558_p7 }
 0x14a   :  { %566 = shalt.err (!%p563_p9)
}
 0x14b   :  { %s580_s20 = smov 192   ;;  %s581_s21 = smov 12  }
 0x14c   :  { %380 = dma.vmem_to_hbm [thread:$0]  %s375_s12, 384, %s644_s3, [#allocation4], %s580_s20, %s580_s20, %s581_s21  }
 0x14d   :  { %571 = dma.done.wait [#allocation4], 384  }
 0x14e   :  { %572 = vsyncadd [#allocation4], 4294966912 }
 0x14f   :  { %384 = vsyncpa [#allocation3], 1 }
 0x150   :  { %385 = vsyncpa [#allocation6], 1 }
 0x151   :  { %386 = vsyncpa [#allocation4], 1 }

</bundles_post_ra>
